<compile_context>
chip_gen: v5e
topology: v5e:2x2
jax: 0.10.0
libtpu: 0.0.40
codegen_flags: <defaults>
</compile_context>

<pallas_src>
import functools

import jax
import jax.numpy as jnp
from jax.experimental import pallas as pl
from jax.experimental.pallas import tpu as pltpu


def _round_up(x, m):
    return ((x + m - 1) // m) * m


def _decoder_layer_kernel(x_ref, w0_ref, b0_ref, w1_ref, b1_ref,
                          w2_ref, b2_ref, o_ref, *, eps):
    """Fused pre-norm decoder block on one [tm, H] row tile.

    Three sublayers (LN affine + bias pre-folded into w_k/b_k in the wrapper):
        x = x + (LN_core(x) @ w_k + b_k),   k = 0, 1, 2
    Rows are fully independent, so a ragged last tile (uninitialized padding
    rows in VMEM) is safe: garbage stays confined to its own rows and the
    partial output store is masked by Pallas.  Do NOT add cross-row
    reductions to this body without reintroducing explicit row masking.
    """
    x = x_ref[...].astype(jnp.float32)                       # (tm, H) f32 residual
    H = x.shape[-1]
    inv_nm1 = 1.0 / (H - 1)

    for w_ref, b_ref in ((w0_ref, b0_ref), (w1_ref, b1_ref), (w2_ref, b2_ref)):
        # --- LayerNorm stats (torch parity: unbiased std, denom (std + eps)) ---
        mean = jnp.mean(x, axis=-1, keepdims=True)
        c = x - mean
        var_u = jnp.sum(c * c, axis=-1, keepdims=True) * inv_nm1
        inv = pl.reciprocal(jnp.sqrt(var_u) + eps, approx=True)   # EUP slot, ~free
        xn = (c * inv).astype(w_ref.dtype)                        # bf16 MXU operand
        # --- Linear(H -> H): bf16 x bf16 -> f32 accumulate on the MXU ---
        y = jnp.dot(xn, w_ref[...], preferred_element_type=jnp.float32)
        # --- dropout (eval mode: identity) + residual add in f32 ---
        x = x + y + b_ref[...]

    o_ref[...] = x.astype(o_ref.dtype)


def _pick_row_tile(rows, H, vmem_limit_bytes, weight_bytes):
    """Row tile: ~2 MiB f32 activation tile scaled with H, clamped to the VMEM
    budget, and capped so the row grid has >= 2 steps when rows allow it
    (so v7x's two TensorCores both get work via dimension_semantics)."""
    tm = (2 * 1024 * 1024) // (4 * H)             # ~2 MiB of f32 rows
    tm = max(256, min(tm, 4096))
    # Activation-side VMEM per row: double-buffered in/out f32 tiles plus
    # ~4 f32-sized in-kernel temporaries.
    per_row = (2 + 2 + 4) * H * 4
    budget = max(vmem_limit_bytes - weight_bytes - (2 << 20), 1 << 20)
    while tm > 8 and tm * per_row > budget:
        tm //= 2
    cap = _round_up(-(-rows // 2), 8) if rows > 8 else _round_up(rows, 8)
    return max(8, min(_round_up(tm, 8), cap))


def decoder_layer(x, memory, src_mask, tgt_mask, params, *, eps=1e-6,
                  vmem_limit_bytes=40 * 1024 * 1024):
    """Mirrors DecoderLayer.forward with Linear stand-ins for the injected modules."""
    # TODO(synk): self_attn / src_attn / feed_forward are externally injected
    # nn.Modules in the PyTorch DecoderLayer; they are instantiated here as
    # Linear(size->size) stand-ins, so `memory`, `src_mask`, `tgt_mask` are
    # unused by the stand-ins.
    B, S, H = x.shape
    rows = B * S
    f32 = jnp.float32

    # One-time weight prep: fold each LayerNorm affine into its sublayer linear.
    #   (g*n + beta) @ W + b  ==  n @ (g[:,None]*W)  +  (beta @ W + b)
    def fold(g, beta, w, b):
        w32 = w.astype(f32)
        w_eff = (g.astype(f32)[:, None] * w32).astype(jnp.bfloat16)
        b_eff = (beta.astype(f32) @ w32 + b.astype(f32)).reshape(1, H)
        return w_eff, b_eff

    w0, b0 = fold(params["ln0_g"], params["ln0_b"], params["w_self"], params["b_self"])
    w1, b1 = fold(params["ln1_g"], params["ln1_b"], params["w_src"], params["b_src"])
    w2, b2 = fold(params["ln2_g"], params["ln2_b"], params["w_ff"], params["b_ff"])

    # Constant-index operands (weights/biases): double buffering never pays off
    # since the block never changes.  Single-buffer them once they are big
    # enough to matter (v7x has only 64 MiB VMEM per TC); for small H keep the
    # default buffering.
    single_buffer_consts = H >= 1024
    w_buf_factor = 1 if single_buffer_consts else 2
    weight_bytes = 3 * w_buf_factor * (H * H * 2 + H * 4)   # bf16 W + f32 bias

    tm = _pick_row_tile(rows, H, vmem_limit_bytes, weight_bytes)
    grid = (pl.cdiv(rows, tm),)   # ragged last tile handled by Pallas masking

    const_idx = lambda i: (0, 0)
    if single_buffer_consts:
        w_spec = pl.BlockSpec((H, H), const_idx, pipeline_mode=pl.Buffered(1))
        b_spec = pl.BlockSpec((1, H), const_idx, pipeline_mode=pl.Buffered(1))
    else:
        w_spec = pl.BlockSpec((H, H), const_idx)
        b_spec = pl.BlockSpec((1, H), const_idx)

    x2 = x.reshape(rows, H)
    kernel = functools.partial(_decoder_layer_kernel, eps=eps)

    cost = pl.CostEstimate(
        flops=3 * 2 * rows * H * H,                      # three H x H matmuls
        transcendentals=3 * 2 * rows,                    # sqrt + reciprocal / row / sublayer
        bytes_accessed=(2 * rows * H * x.dtype.itemsize  # x read + out write (once each)
                        + 3 * H * H * 2                  # bf16 folded weights
                        + 3 * H * 4),                    # f32 folded biases
    )

    out = pl.pallas_call(
        kernel,
        out_shape=jax.ShapeDtypeStruct((rows, H), x.dtype),
        grid_spec=pl.GridSpec(
            grid=grid,
            in_specs=[
                pl.BlockSpec((tm, H), lambda i: (i, 0)),   # activation row tile
                w_spec, b_spec,                            # sublayer 0 (self_attn stand-in)
                w_spec, b_spec,                            # sublayer 1 (src_attn stand-in)
                w_spec, b_spec,                            # sublayer 2 (feed_forward stand-in)
            ],
            out_specs=pl.BlockSpec((tm, H), lambda i: (i, 0)),
        ),
        compiler_params=pltpu.CompilerParams(
            dimension_semantics=("parallel",),
            vmem_limit_bytes=vmem_limit_bytes),
        cost_estimate=cost,
    )(x2, w0, b0, w1, b1, w2, b2)

    return out.reshape(B, S, H)


# ----------------------------- pure-JAX reference ---------------------------

def _ref_sublayer(x, gamma, beta, w, b, eps=1e-6):
    xf = x.astype(jnp.float32)
    H = xf.shape[-1]
    mean = jnp.mean(xf, axis=-1, keepdims=True)
    var_u = jnp.sum((xf - mean) ** 2, axis=-1, keepdims=True) / (H - 1)
    std = jnp.sqrt(var_u)
    xn = gamma * (xf - mean) / (std + eps) + beta
    y = xn @ w.astype(jnp.float32) + b
    return xf + y


def _ref_decoder_layer(x, memory, src_mask, tgt_mask, params, eps=1e-6):
    x = _ref_sublayer(x, params["ln0_g"], params["ln0_b"],
                      params["w_self"], params["b_self"], eps)
    x = _ref_sublayer(x, params["ln1_g"], params["ln1_b"],
                      params["w_src"], params["b_src"], eps)
    x = _ref_sublayer(x, params["ln2_g"], params["ln2_b"],
                      params["w_ff"], params["b_ff"], eps)
    return x


if __name__ == "__main__":
    key = jax.random.PRNGKey(0)
    B, S, S_mem, H = 2, 8, 10, 128        # batch, tgt seq, src seq, hidden

    keys = jax.random.split(key, 14)
    x = jax.random.normal(keys[0], (B, S, H), dtype=jnp.float32)
    memory = jax.random.normal(keys[1], (B, S_mem, H), dtype=jnp.float32)  # unused by stand-ins
    src_mask = None
    tgt_mask = None

    def make_ln(kg, kb):
        g = 1.0 + 0.1 * jax.random.normal(kg, (H,), dtype=jnp.float32)   # a_2
        b = 0.05 * jax.random.normal(kb, (H,), dtype=jnp.float32)        # b_2
        return g, b

    ln0_g, ln0_b = make_ln(keys[2], keys[3])
    ln1_g, ln1_b = make_ln(keys[4], keys[5])
    ln2_g, ln2_b = make_ln(keys[6], keys[7])

    params = dict(
        ln0_g=ln0_g, ln0_b=ln0_b,
        ln1_g=ln1_g, ln1_b=ln1_b,
        ln2_g=ln2_g, ln2_b=ln2_b,
        w_self=0.02 * jax.random.normal(keys[8], (H, H), dtype=jnp.float32),
        b_self=jnp.zeros((H,), dtype=jnp.float32),
        w_src=0.02 * jax.random.normal(keys[9], (H, H), dtype=jnp.float32),
        b_src=jnp.zeros((H,), dtype=jnp.float32),
        w_ff=0.02 * jax.random.normal(keys[10], (H, H), dtype=jnp.float32),
        b_ff=jnp.zeros((H,), dtype=jnp.float32),
    )

    # --- main check (rows divide the tile evenly) ---
    out = decoder_layer(x, memory, src_mask, tgt_mask, params)
    out = jax.block_until_ready(out)
    ref = _ref_decoder_layer(x, memory, src_mask, tgt_mask, params)
    assert out.shape == (B, S, H)
    # Tolerance reflects bf16 MXU operands + EUP approx reciprocal (f32 accum).
    assert jnp.allclose(out, ref, atol=3e-2, rtol=3e-2), "mismatch vs reference"

    # --- ragged-rows check (rows % tm != 0): exercises the cdiv grid / masked
    #     partial last tile that replaced the old pad + slice path ---
    x_r = jax.random.normal(keys[11], (3, 5, H), dtype=jnp.float32)   # rows = 15
    out_r = jax.block_until_ready(decoder_layer(x_r, memory, src_mask, tgt_mask, params))
    ref_r = _ref_decoder_layer(x_r, memory, src_mask, tgt_mask, params)
    assert out_r.shape == (3, 5, H)
    assert jnp.allclose(out_r, ref_r, atol=3e-2, rtol=3e-2), "ragged-tile mismatch vs reference"

    print("KERNEL_OK")
</pallas_src>

<mosaic_0001>
module attributes {stable_mosaic.version = 11 : i64} {
  func.func @_decoder_layer_kernel(%arg0: i32, %arg1: memref<8x128xf32, #tpu.memory_space<vmem>>, %arg2: memref<128x128xbf16, #tpu.memory_space<vmem>>, %arg3: memref<1x128xf32, #tpu.memory_space<vmem>>, %arg4: memref<128x128xbf16, #tpu.memory_space<vmem>>, %arg5: memref<1x128xf32, #tpu.memory_space<vmem>>, %arg6: memref<128x128xbf16, #tpu.memory_space<vmem>>, %arg7: memref<1x128xf32, #tpu.memory_space<vmem>>, %arg8: memref<8x128xf32, #tpu.memory_space<vmem>>) attributes {dimension_semantics = [#tpu.dimension_semantics<parallel>], iteration_bounds = array<i64: 2>, scalar_prefetch = 0 : i64, scratch_operands = 0 : i64, tpu.core_type = #tpu.core_type<tc>, window_params = [{transform_indices = @transform_0, window_bounds = array<i64: 8, 128>}, {pipeline_mode = #tpu.pipeline_mode<synchronous>, transform_indices = @transform_1, window_bounds = array<i64: 128, 128>}, {pipeline_mode = #tpu.pipeline_mode<synchronous>, transform_indices = @transform_2, window_bounds = array<i64: 1, 128>}, {pipeline_mode = #tpu.pipeline_mode<synchronous>, transform_indices = @transform_3, window_bounds = array<i64: 128, 128>}, {pipeline_mode = #tpu.pipeline_mode<synchronous>, transform_indices = @transform_4, window_bounds = array<i64: 1, 128>}, {pipeline_mode = #tpu.pipeline_mode<synchronous>, transform_indices = @transform_5, window_bounds = array<i64: 128, 128>}, {pipeline_mode = #tpu.pipeline_mode<synchronous>, transform_indices = @transform_6, window_bounds = array<i64: 1, 128>}, {transform_indices = @transform_7, window_bounds = array<i64: 8, 128>}]} {
    %c0 = arith.constant 0 : index
    %c0_0 = arith.constant 0 : index
    %0 = vector.load %arg1[%c0, %c0_0] : memref<8x128xf32, #tpu.memory_space<vmem>>, vector<8x128xf32>
    %cst = arith.constant dense<0.000000e+00> : vector<8xf32>
    %1 = vector.multi_reduction <add>, %0, %cst [1] : vector<8x128xf32> to vector<8xf32>
    %2 = vector.shape_cast %1 : vector<8xf32> to vector<8x1xf32>
    %cst_1 = arith.constant 1.280000e+02 : f32
    %3 = vector.broadcast %cst_1 : f32 to vector<8x1xf32>
    %4 = arith.divf %2, %3 : vector<8x1xf32>
    %5 = vector.broadcast %4 : vector<8x1xf32> to vector<8x128xf32>
    %6 = arith.subf %0, %5 : vector<8x128xf32>
    %7 = arith.mulf %6, %6 : vector<8x128xf32>
    %cst_2 = arith.constant dense<0.000000e+00> : vector<8xf32>
    %8 = vector.multi_reduction <add>, %7, %cst_2 [1] : vector<8x128xf32> to vector<8xf32>
    %9 = vector.shape_cast %8 : vector<8xf32> to vector<8x1xf32>
    %cst_3 = arith.constant 0.00787401571 : f32
    %10 = vector.broadcast %cst_3 : f32 to vector<8x1xf32>
    %11 = arith.mulf %9, %10 : vector<8x1xf32>
    %12 = math.sqrt %11 : vector<8x1xf32>
    %cst_4 = arith.constant 9.99999997E-7 : f32
    %13 = vector.broadcast %cst_4 : f32 to vector<8x1xf32>
    %14 = arith.addf %12, %13 : vector<8x1xf32>
    %15 = tpu.reciprocal %14 {approx = true} : vector<8x1xf32> -> vector<8x1xf32>
    %16 = vector.broadcast %15 : vector<8x1xf32> to vector<8x128xf32>
    %17 = arith.mulf %6, %16 : vector<8x128xf32>
    %18 = arith.truncf %17 : vector<8x128xf32> to vector<8x128xbf16>
    %c0_5 = arith.constant 0 : index
    %c0_6 = arith.constant 0 : index
    %19 = vector.load %arg2[%c0_5, %c0_6] : memref<128x128xbf16, #tpu.memory_space<vmem>>, vector<128x128xbf16>
    %cst_7 = arith.constant dense<0.000000e+00> : vector<8x128xf32>
    %20 = tpu.matmul %18, %19, %cst_7 {dimension_numbers = #tpu.dot_dimension_numbers<[1], [0], [0], [1], [0, 0, 1, 1], [], []>} : vector<8x128xbf16>, vector<128x128xbf16>, vector<8x128xf32> -> vector<8x128xf32>
    %21 = arith.addf %0, %20 : vector<8x128xf32>
    %c0_8 = arith.constant 0 : index
    %c0_9 = arith.constant 0 : index
    %22 = vector.load %arg3[%c0_8, %c0_9] : memref<1x128xf32, #tpu.memory_space<vmem>>, vector<1x128xf32>
    %23 = vector.broadcast %22 : vector<1x128xf32> to vector<8x128xf32>
    %24 = arith.addf %21, %23 : vector<8x128xf32>
    %cst_10 = arith.constant dense<0.000000e+00> : vector<8xf32>
    %25 = vector.multi_reduction <add>, %24, %cst_10 [1] : vector<8x128xf32> to vector<8xf32>
    %26 = vector.shape_cast %25 : vector<8xf32> to vector<8x1xf32>
    %cst_11 = arith.constant 1.280000e+02 : f32
    %27 = vector.broadcast %cst_11 : f32 to vector<8x1xf32>
    %28 = arith.divf %26, %27 : vector<8x1xf32>
    %29 = vector.broadcast %28 : vector<8x1xf32> to vector<8x128xf32>
    %30 = arith.subf %24, %29 : vector<8x128xf32>
    %31 = arith.mulf %30, %30 : vector<8x128xf32>
    %cst_12 = arith.constant dense<0.000000e+00> : vector<8xf32>
    %32 = vector.multi_reduction <add>, %31, %cst_12 [1] : vector<8x128xf32> to vector<8xf32>
    %33 = vector.shape_cast %32 : vector<8xf32> to vector<8x1xf32>
    %cst_13 = arith.constant 0.00787401571 : f32
    %34 = vector.broadcast %cst_13 : f32 to vector<8x1xf32>
    %35 = arith.mulf %33, %34 : vector<8x1xf32>
    %36 = math.sqrt %35 : vector<8x1xf32>
    %cst_14 = arith.constant 9.99999997E-7 : f32
    %37 = vector.broadcast %cst_14 : f32 to vector<8x1xf32>
    %38 = arith.addf %36, %37 : vector<8x1xf32>
    %39 = tpu.reciprocal %38 {approx = true} : vector<8x1xf32> -> vector<8x1xf32>
    %40 = vector.broadcast %39 : vector<8x1xf32> to vector<8x128xf32>
    %41 = arith.mulf %30, %40 : vector<8x128xf32>
    %42 = arith.truncf %41 : vector<8x128xf32> to vector<8x128xbf16>
    %c0_15 = arith.constant 0 : index
    %c0_16 = arith.constant 0 : index
    %43 = vector.load %arg4[%c0_15, %c0_16] : memref<128x128xbf16, #tpu.memory_space<vmem>>, vector<128x128xbf16>
    %cst_17 = arith.constant dense<0.000000e+00> : vector<8x128xf32>
    %44 = tpu.matmul %42, %43, %cst_17 {dimension_numbers = #tpu.dot_dimension_numbers<[1], [0], [0], [1], [0, 0, 1, 1], [], []>} : vector<8x128xbf16>, vector<128x128xbf16>, vector<8x128xf32> -> vector<8x128xf32>
    %45 = arith.addf %24, %44 : vector<8x128xf32>
    %c0_18 = arith.constant 0 : index
    %c0_19 = arith.constant 0 : index
    %46 = vector.load %arg5[%c0_18, %c0_19] : memref<1x128xf32, #tpu.memory_space<vmem>>, vector<1x128xf32>
    %47 = vector.broadcast %46 : vector<1x128xf32> to vector<8x128xf32>
    %48 = arith.addf %45, %47 : vector<8x128xf32>
    %cst_20 = arith.constant dense<0.000000e+00> : vector<8xf32>
    %49 = vector.multi_reduction <add>, %48, %cst_20 [1] : vector<8x128xf32> to vector<8xf32>
    %50 = vector.shape_cast %49 : vector<8xf32> to vector<8x1xf32>
    %cst_21 = arith.constant 1.280000e+02 : f32
    %51 = vector.broadcast %cst_21 : f32 to vector<8x1xf32>
    %52 = arith.divf %50, %51 : vector<8x1xf32>
    %53 = vector.broadcast %52 : vector<8x1xf32> to vector<8x128xf32>
    %54 = arith.subf %48, %53 : vector<8x128xf32>
    %55 = arith.mulf %54, %54 : vector<8x128xf32>
    %cst_22 = arith.constant dense<0.000000e+00> : vector<8xf32>
    %56 = vector.multi_reduction <add>, %55, %cst_22 [1] : vector<8x128xf32> to vector<8xf32>
    %57 = vector.shape_cast %56 : vector<8xf32> to vector<8x1xf32>
    %cst_23 = arith.constant 0.00787401571 : f32
    %58 = vector.broadcast %cst_23 : f32 to vector<8x1xf32>
    %59 = arith.mulf %57, %58 : vector<8x1xf32>
    %60 = math.sqrt %59 : vector<8x1xf32>
    %cst_24 = arith.constant 9.99999997E-7 : f32
    %61 = vector.broadcast %cst_24 : f32 to vector<8x1xf32>
    %62 = arith.addf %60, %61 : vector<8x1xf32>
    %63 = tpu.reciprocal %62 {approx = true} : vector<8x1xf32> -> vector<8x1xf32>
    %64 = vector.broadcast %63 : vector<8x1xf32> to vector<8x128xf32>
    %65 = arith.mulf %54, %64 : vector<8x128xf32>
    %66 = arith.truncf %65 : vector<8x128xf32> to vector<8x128xbf16>
    %c0_25 = arith.constant 0 : index
    %c0_26 = arith.constant 0 : index
    %67 = vector.load %arg6[%c0_25, %c0_26] : memref<128x128xbf16, #tpu.memory_space<vmem>>, vector<128x128xbf16>
    %cst_27 = arith.constant dense<0.000000e+00> : vector<8x128xf32>
    %68 = tpu.matmul %66, %67, %cst_27 {dimension_numbers = #tpu.dot_dimension_numbers<[1], [0], [0], [1], [0, 0, 1, 1], [], []>} : vector<8x128xbf16>, vector<128x128xbf16>, vector<8x128xf32> -> vector<8x128xf32>
    %69 = arith.addf %48, %68 : vector<8x128xf32>
    %c0_28 = arith.constant 0 : index
    %c0_29 = arith.constant 0 : index
    %70 = vector.load %arg7[%c0_28, %c0_29] : memref<1x128xf32, #tpu.memory_space<vmem>>, vector<1x128xf32>
    %71 = vector.broadcast %70 : vector<1x128xf32> to vector<8x128xf32>
    %72 = arith.addf %69, %71 : vector<8x128xf32>
    %c0_30 = arith.constant 0 : index
    %c0_31 = arith.constant 0 : index
    %73 = vector.load %arg8[%c0_30, %c0_31] : memref<8x128xf32, #tpu.memory_space<vmem>>, vector<8x128xf32>
    tpu.vector_store %arg8[%c0_30, %c0_31], %72 {strides = array<i32>} : memref<8x128xf32, #tpu.memory_space<vmem>>, vector<8x128xf32>,
    return
  }
  func.func @transform_0(%arg0: i32) -> (i32, i32) {
    %c0_i32 = arith.constant 0 : i32
    %c0_i32_0 = arith.constant 0 : i32
    return %arg0, %c0_i32 : i32, i32
  }
  func.func @transform_1(%arg0: i32) -> (i32, i32) {
    %c0_i32 = arith.constant 0 : i32
    %c0_i32_0 = arith.constant 0 : i32
    %c0_i32_1 = arith.constant 0 : i32
    return %c0_i32, %c0_i32_0 : i32, i32
  }
  func.func @transform_2(%arg0: i32) -> (i32, i32) {
    %c0_i32 = arith.constant 0 : i32
    %c0_i32_0 = arith.constant 0 : i32
    %c0_i32_1 = arith.constant 0 : i32
    return %c0_i32, %c0_i32_0 : i32, i32
  }
  func.func @transform_3(%arg0: i32) -> (i32, i32) {
    %c0_i32 = arith.constant 0 : i32
    %c0_i32_0 = arith.constant 0 : i32
    %c0_i32_1 = arith.constant 0 : i32
    return %c0_i32, %c0_i32_0 : i32, i32
  }
  func.func @transform_4(%arg0: i32) -> (i32, i32) {
    %c0_i32 = arith.constant 0 : i32
    %c0_i32_0 = arith.constant 0 : i32
    %c0_i32_1 = arith.constant 0 : i32
    return %c0_i32, %c0_i32_0 : i32, i32
  }
  func.func @transform_5(%arg0: i32) -> (i32, i32) {
    %c0_i32 = arith.constant 0 : i32
    %c0_i32_0 = arith.constant 0 : i32
    %c0_i32_1 = arith.constant 0 : i32
    return %c0_i32, %c0_i32_0 : i32, i32
  }
  func.func @transform_6(%arg0: i32) -> (i32, i32) {
    %c0_i32 = arith.constant 0 : i32
    %c0_i32_0 = arith.constant 0 : i32
    %c0_i32_1 = arith.constant 0 : i32
    return %c0_i32, %c0_i32_0 : i32, i32
  }
  func.func @transform_7(%arg0: i32) -> (i32, i32) {
    %c0_i32 = arith.constant 0 : i32
    %c0_i32_0 = arith.constant 0 : i32
    return %arg0, %c0_i32 : i32, i32
  }
}

</mosaic_0001>

<bundles_post_ra>
// kernel: tpu_custom_call.1
= control target key start
LH: loop header
LB: loop body
LE: loop exit
PB: predicated region body
PF: predicated region fallthrough
CT: control target
= control target key end

     0   :  { %s1442_s0 = inlined_call_operand.hbm [shape: f32[16,128], index: 0, kind: input, shape index: {}]   ;;  %s1443_s1 = inlined_call_operand.hbm [shape: bf16[128,128], index: 1, kind: input, shape index: {}]   ;;  %s1444_s2 = inlined_call_operand.vmem [shape: f32[1,128], index: 2, kind: input, shape index: {}]   ;;  %s1445_s3 = inlined_call_operand.hbm [shape: bf16[128,128], index: 3, kind: input, shape index: {}]   ;;  %s1446_s4 = inlined_call_operand.vmem [shape: f32[1,128], index: 4, kind: input, shape index: {}]   ;;  %s1447_s5 = inlined_call_operand.hbm [shape: bf16[128,128], index: 5, kind: input, shape index: {}]   ;;  %s1448_s6 = inlined_call_operand.vmem [shape: f32[1,128], index: 6, kind: input, shape index: {}]   ;;  %s1449_s7 = inlined_call_operand.hbm [shape: f32[16,128], index: 7, kind: output, shape index: {}]  }
   0x1   :  { %1450 = sst [smem:[#allocation15_spill]] %s1443_s1 }
   0x2   :  { %12 = vsyncpa [#allocation3], 0 }
   0x3   :  { %14 = vsyncpa [#allocation3 + $0x1], 0 }
   0x4   :  { %15 = vsyncpa [#allocation6], 0 }
   0x5   :  { %16 = vsyncpa [#allocation9], 0 }
   0x6   :  { %17 = vsyncpa [#allocation4], 0 }
   0x7   :  { %19 = vsyncpa [#allocation4 + $0x1], 0  ;;  %s1268_s24 = smov 0   ;;  %s1270_s25 = smov 0  }
   0x8   :  { %s1272_s26 = smov 0   ;;  %s1274_s27 = smov 0  }
   0x9 LB: > { %s1451_s1 = sld [smem:[#allocation15_spill]]  ;;  %s1292_s8 = sadd.s32 4294967295, %s1220_s27   ;;  %s1220_s27 = sphi %s1274_s27, %s1462_s27   ;;  %s1216_s26 = sphi %s1272_s26, %s1461_s26   ;;  %s1212_s25 = sphi %s1270_s25, %s1460_s25   ;;  %s1208_s24 = sphi %s1268_s24, %s1459_s24  }
   0xa   : > { %p792_p0 = scmp.ge.s32.totalorder %s1220_s27, 1  ;;  %p46_p1 = scmp.eq.s32.totalorder %s1292_s8, 0 }
   0xb   : > { %p208_p2 = scmp.lt.s32.totalorder %s1220_s27, 3  ;;  %s1222_s10 = smov [#allocation5]  }
   0xc   : > { %s221_s11 = sshll.u32 %s1222_s10, 4  ;;  %s236_s14 = sshll.u32 %s1445_s3, 4  ;;  %s222_s11 = int_to_ptr.vmem [resolvable:$true] %s221_s11  ;;  %s237_s14 = int_to_ptr.hbm [resolvable:$true] %s236_s14 }
   0xd   : > { %p1297_p3 = pnand %p792_p0, %p208_p2  ;;  %s253_s18 = sshll.u32 %s1447_s5, 4  ;;  %s254_s18 = int_to_ptr.hbm [resolvable:$true] %s253_s18 }
   0xe   : > { %s1223_s19 = smov [#allocation7]   ;;  %s1224_s21 = smov 64  }
   0xf   : > { %s219_s30 = sshll.u32 %s1451_s1, 4  ;;  %p945_p4 = pneg %p1297_p3  ;;  %s220_s30 = int_to_ptr.hbm [resolvable:$true] %s219_s30 }
  0x10   : > { %s238_s20 = sshll.u32 %s1223_s19, 4  ;;  %s1225_s22 = smov 4   ;;  %s239_s20 = int_to_ptr.vmem [resolvable:$true] %s238_s20 }
  0x11   : > { %p1309_p6 = pnand %p945_p4, %p46_p1  ;;  %s1226_s23 = smov [#allocation8]  }
  0x12   : > { %s255_s28 = sshll.u32 %s1226_s23, 4  ;;  %s791_s29 = sadd.s32 4294967294, %s1220_s27   ;;  %s256_s28 = int_to_ptr.vmem [resolvable:$true] %s255_s28 }
  0x13   : > { %948 = dma.hbm_to_vmem [thread:$0]  (!%p1309_p6), %s220_s30, 1024, %s222_s11, [#allocation6], %s1224_s21, %s1224_s21, %s1225_s22  }
  0x14   : > { %951 = dma.hbm_to_vmem [thread:$0]  (!%p1309_p6), %s237_s14, 1024, %s239_s20, [#allocation6], %s1224_s21, %s1224_s21, %s1225_s22  }
  0x15   : > { %954 = dma.hbm_to_vmem [thread:$0]  (!%p1309_p6), %s254_s18, 1024, %s256_s28, [#allocation9], %s1224_s21, %s1224_s21, %s1225_s22  }
  0x16   : > { %s1324_s10 = sadd.s32 1, %s1220_s27   ;;  %s32_s12 = sadd.s32 1, %s1216_s26 }
  0x17   : > { %s29_s30 = ssub.s32 %s1220_s27, %s1324_s10  ;;  %p39_p7 = scmp.ne.s32.totalorder %s1216_s26, %s1212_s25 }
  0x18   : > { %p30_p8 = scmp.eq.s32.totalorder %s29_s30, 0  ;;  %p40_p9 = scmp.eq.s32.totalorder %s1220_s27, 0 }
  0x19   : > { %p45_p10 = scmp.ne.s32.totalorder %s1212_s25, %s1208_s24  ;;  %p195_p11 = scmp.eq.s32.totalorder %s1292_s8, 1 }
  0x1a   : > { %s1336_s11 = scalar_select %p30_p8, %s1216_s26, %s32_s12  }
  0x1b   : > { %p1340_p12 = por %p46_p1, %p45_p10  ;;  %p1344_p13 = por %p195_p11, %p39_p7 }
  0x1c   : > { %p201_p0 = scmp.eq.s32.totalorder %s791_s29, 1  ;;  %p41_p2 = por %p40_p9, %p39_p7 }
  0x1d   : > { %s272_s15 = sand.u32 1, %s1216_s26   ;;  %p966_p6 = scmp.lt.s32.totalorder %s1220_s27, 2 }
  0x1e   : > { %p1349_p4 = por %p201_p0, %p45_p10  ;;  %s797_s17 = sshll.u32 %s272_s15, 3 }
  0x1f   : > { %s798_s18 = sshll.u32 %s1220_s27, 3  ;;  %s276_s23 = scalar_lea.vmem [#allocation2], %s797_s17 }
  0x20   : > { %s280_s21 = scalar_lea.hbm %s1442_s0, %s798_s18  ;;  %s284_s28 = sshll.u32 %s276_s23, 4  ;;  %s285_s28 = int_to_ptr.vmem [resolvable:$true] %s284_s28 }
  0x21   : > { %s282_s22 = sshll.u32 %s280_s21, 4  ;;  %p1358_p8 = pnand %p966_p6, %p41_p2  ;;  %s283_s22 = int_to_ptr.hbm [resolvable:$true] %s282_s22 }
  0x22   : > { %s273_s12 = scalar_lea.sflag [#allocation3], %s272_s15  ;;  %s1116_s30 = sshra.s32 %s283_s22, 4  ;;  %s1117_s30 = int_to_ptr.hbm [resolvable:$true] %s1116_s30 }
  0x23   : > { %s1118_s1 = scalar_lea.hbm %s1117_s30, 8  ;;  %p1120_p9 = pneg %p1358_p8 }
  0x24   : > { %p1119_p7 = scmp.ne.s32.totalorder %s1117_s30, %s1118_s1  ;;  %s1123_s17 = scalar_lea.hbm %s1442_s0, 16 }
  0x25   : > { %p1124_p0 = scmp.lt.s32.totalorder %s1117_s30, %s1442_s0  ;;  %p1125_p2 = scmp.lt.s32.totalorder %s1123_s17, %s1118_s1 }
  0x26   : > { %p1121_p10 = pnand %p1120_p9, %p1119_p7 }
  0x27   : > { %p1126_p6 = por %p1125_p2, %p1124_p0 }
  0x28   : > { %p1122_p11 = pneg %p1121_p10 }
  0x2a   : > { %p1127_p5 = pnand %p1126_p6, %p1122_p11 }
  0x2c   : > { %1130 = shalt.err (!%p1127_p5)
}
  0x2d   : > { %958 = dma.hbm_to_vmem [thread:$0]  (!%p1358_p8), %s283_s22, 128, %s285_s28, %s273_s12  }
  0x2e   : > { %293 = sbr.rel (%p1297_p3) target bundleno = 1279 (0x4ff), region = 48  ;;  %s1375_s15 = sand.u32 (!%p1297_p3), 1, %s1212_s25  }
  0x2f   : > { %s800_s23 = sshll.u32 (!%p1297_p3), %s1375_s15, 3  ;;  %s296_s18 = scalar_lea.sflag (!%p1297_p3), [#allocation3], %s1375_s15 }
  0x30   : > { %s299_s1 = scalar_lea.vmem (!%p1297_p3), [#allocation2], %s800_s23 }
  0x33   : > { %1191 = dma.done.wait (%p1340_p12), %s296_s18, 128  }
  0x34   : > { %1193 = vsyncadd (%p1340_p12), %s296_s18, 4294967168 }
  0x35   : > { %1195 = dma.done.wait (%p46_p1), [#allocation6], 2048  }
  0x36   : > { %1197 = vsyncadd (%p46_p1), [#allocation6], 4294965248 }
  0x37   : > { %1199 = dma.done.wait (%p46_p1), [#allocation9], 1024  }
  0x38   : > { %1201 = vsyncadd (%p46_p1), [#allocation9], 4294966272  ;;  %v346_v0 = vld [vmem:[%s299_s1] sm:$0xff]  ;;  %v1227_v1 = vmov 128.0   ;;  %v910_v14 = vld [vmem:[#allocation5 + $0x28] sm:$0xff]  ;;  %s902_s29 = sshll.u32 %s1292_s8, 3 }
  0x39   : > { %347 = vadd.xlane.f32.xlu0 %v346_v0  ;;  %1012 = vrcp.f32 %v1227_v1  ;;  %v912_v12 = vld [vmem:[#allocation5 + $0x38] sm:$0xff]  ;;  %v911_v13 = vld [vmem:[#allocation5 + $0x30] sm:$0xff]  ;;  %v909_v15 = vld [vmem:[#allocation5 + $0x20] sm:$0xff]  ;;  %s687_s19 = scalar_lea.hbm %s1449_s7, %s902_s29  ;;  %s345_s21 = scalar_lea.vmem [#allocation10], %s800_s23 }
  0x3a   : > { %442 = vmatpush.bf16.msra.mxu0 %v912_v12  ;;  %v908_v16 = vld [vmem:[#allocation5 + $0x18] sm:$0xff]  ;;  %v907_v17 = vld [vmem:[#allocation5 + $0x10] sm:$0xff]  ;;  %v906_v18 = vld [vmem:[#allocation5 + $0x8] sm:$0xff]  ;;  %s689_s18 = sshll.u32 %s345_s21, 4  ;;  %s691_s1 = sshll.u32 %s687_s19, 4  ;;  %s690_s18 = int_to_ptr.vmem [resolvable:$true] %s689_s18  ;;  %s692_s1 = int_to_ptr.hbm [resolvable:$true] %s691_s1 }
  0x3b   : > { %v905_v19 = vld [vmem:[#allocation5] sm:$0xff]  ;;  %v1009_v36 = vld [vmem:[%s1444_s2] ss:$0 sm:$0xff]  ;;  %v920_v45 = vld [vmem:[#allocation7 + $0x38] sm:$0xff]  ;;  %s677_s8 = scalar_lea.sflag [#allocation4], %s1375_s15  ;;  %s1160_s9 = sshra.s32 %s692_s1, 4  ;;  %s1161_s9 = int_to_ptr.hbm [resolvable:$true] %s1160_s9 }
  0x3c   : > { %549 = vmatpush.bf16.msra.mxu1 %v920_v45  ;;  %v919_v46 = vld [vmem:[#allocation7 + $0x30] sm:$0xff]  ;;  %v918_v47 = vld [vmem:[#allocation7 + $0x28] sm:$0xff]  ;;  %v917_v48 = vld [vmem:[#allocation7 + $0x20] sm:$0xff]  ;;  %s1162_s13 = scalar_lea.hbm %s1161_s9, 8  ;;  %s1166_s29 = scalar_lea.hbm %s1449_s7, 16 }
  0x3d   : > { %v916_v49 = vld [vmem:[#allocation7 + $0x18] sm:$0xff]  ;;  %v915_v50 = vld [vmem:[#allocation7 + $0x10] sm:$0xff]  ;;  %v914_v51 = vld [vmem:[#allocation7 + $0x8] sm:$0xff]  ;;  %p1163_p1 = scmp.ne.s32.totalorder %s1161_s9, %s1162_s13  ;;  %p1167_p12 = scmp.lt.s32.totalorder %s1161_s9, %s1449_s7 }
  0x3e   : > { %443 = vmatpush.bf16.msra.mxu0 %v911_v13  ;;  %v913_v52 = vld [vmem:[#allocation7] sm:$0xff]  ;;  %p1168_p8 = scmp.lt.s32.totalorder %s1166_s29, %s1162_s13 }
  0x3f   : > { %v1013_v2 = vpop.eup %1012  ;;  %p1164_p3 = pnand %p1163_p1, %p1344_p13 }
  0x40   : > { %v350_v3 = vmul.f32 128.0, %v1013_v2  ;;  %vm354_vm0 = vweird.f32 %v1013_v2  ;;  %550 = vmatpush.bf16.msra.mxu1 %v919_v46  ;;  %p1169_p7 = por %p1168_p8, %p1167_p12 }
  0x41   : > { %p1165_p5 = pneg %p1164_p3 }
  0x42   : > { %v351_v4 = vsub.f32 1.0, %v350_v3  ;;  %444 = vmatpush.bf16.msra.mxu0 %v910_v14 }
  0x43   : > { %p1170_p9 = pnand %p1169_p7, %p1165_p5 }
  0x44   : > { %v352_v5 = vmul.f32 %v1013_v2, %v351_v4  ;;  %551 = vmatpush.bf16.msra.mxu1 %v918_v47 }
  0x46   : > { %v353_v6 = vadd.f32 %v1013_v2, %v352_v5  ;;  %445 = vmatpush.bf16.msra.mxu0 %v909_v15  ;;  %v1010_v5 = vld [vmem:[%s1446_s4] ss:$0 sm:$0xff]  ;;  %v928_v15 = vld [vmem:[#allocation8 + $0x38] sm:$0xff] }
  0x47   : > { %656 = vmatpush.bf16.msra.mxu2 %v928_v15 }
  0x48   : > { %v1393_v7 = vsel %vm354_vm0, %v1013_v2, %v353_v6  ;;  %552 = vmatpush.bf16.msra.mxu1 %v917_v48 }
  0x4a   : > { %446 = vmatpush.bf16.msra.mxu0 %v908_v16  ;;  %v927_v16 = vld [vmem:[#allocation8 + $0x30] sm:$0xff] }
  0x4b   : > { %657 = vmatpush.bf16.msra.mxu2 %v927_v16 }
  0x4c   : > { %553 = vmatpush.bf16.msra.mxu1 %v916_v49 }
  0x4e   : > { %447 = vmatpush.bf16.msra.mxu0 %v907_v17  ;;  %v926_v17 = vld [vmem:[#allocation8 + $0x28] sm:$0xff] }
  0x4f   : > { %658 = vmatpush.bf16.msra.mxu2 %v926_v17 }
  0x50   : > { %554 = vmatpush.bf16.msra.mxu1 %v915_v50 }
  0x52   : > { %448 = vmatpush.bf16.msra.mxu0 %v906_v18  ;;  %v925_v18 = vld [vmem:[#allocation8 + $0x20] sm:$0xff] }
  0x53   : > { %659 = vmatpush.bf16.msra.mxu2 %v925_v18 }
  0x54   : > { %555 = vmatpush.bf16.msra.mxu1 %v914_v51 }
  0x56   : > { %449 = vmatpush.bf16.msra.mxu0 %v905_v19  ;;  %v924_v19 = vld [vmem:[#allocation8 + $0x18] sm:$0xff] }
  0x57   : > { %660 = vmatpush.bf16.msra.mxu2 %v924_v19 }
  0x58   : > { %556 = vmatpush.bf16.msra.mxu1 %v913_v52 }
  0xac   : > { %v348_v8 = vpop.xlane.xlu0 %347 }
  0xad   : > { %v356_v9 = vmul.f32 %v1393_v7, %v348_v8 }
  0xaf   : > { %v357_v10 = vsub.f32 %v346_v0, %v356_v9 }
  0xb1   : > { %v358_v11 = vmul.f32 %v357_v10, %v357_v10 }
  0xb3   : > { %359 = vadd.xlane.f32.xlu0 %v358_v11 }
 0x126   : > { %v360_v20 = vpop.xlane.xlu0 %359 }
 0x127   : > { %v361_v21 = vmul.f32 0.007874016, %v360_v20  ;;  %v923_v20 = vld [vmem:[#allocation8 + $0x10] sm:$0xff] }
 0x128   : > { %661 = vmatpush.bf16.msra.mxu2 %v923_v20 }
 0x129   : > { %1014 = vrsqrt.f32 %v361_v21  ;;  %vm369_vm1 = vcmp.eq.f32.partialorder %v361_v21, inf  ;;  %v372_v29 = vand.u32 2147483648, %v361_v21  ;;  %vm371_vm2 = vcmp.eq.f32.partialorder %v361_v21, 0.0 }
 0x12f   : > { %v1015_v22 = vpop.eup %1014 }
 0x130   : > { %v363_v23 = vmul.f32 %v1015_v22, %v361_v21 }
 0x132   : > { %v364_v24 = vmul.f32 %v1015_v22, %v363_v23 }
 0x134   : > { %v365_v25 = vmul.f32 0.5, %v364_v24 }
 0x136   : > { %v366_v26 = vsub.f32 1.5, %v365_v25 }
 0x138   : > { %v367_v27 = vmul.f32 %v1015_v22, %v366_v26  ;;  %v921_v22 = vld [vmem:[#allocation8] sm:$0xff] }
 0x13a   : > { %v368_v28 = vmul.f32 %v367_v27, %v361_v21 }
 0x13c   : > { %v370_v30 = vsel %vm369_vm1, %v361_v21, %v368_v28  ;;  %v922_v21 = vld [vmem:[#allocation8 + $0x8] sm:$0xff] }
 0x13d   : > { %v373_v31 = vsel %vm371_vm2, %v372_v29, %v370_v30  ;;  %662 = vmatpush.bf16.msra.mxu2 %v922_v21 }
 0x13e   : > { %v374_v32 = vadd.f32 1e-06, %v373_v31 }
 0x140   : > { %1016 = vrcp.f32 %v374_v32 }
 0x141   : > { %663 = vmatpush.bf16.msra.mxu2 %v921_v22 }
 0x146   : > { %v1017_v33 = vpop.eup %1016 }
 0x147   : > { %v376_v34 = vmul.f32 %v1017_v33, %v357_v10 }
 0x149   : > { %v377_v35 = vpack.c.bf16 %v376_v34, %v376_v34 }
 0x14b   : > { %450 = vmatmul.bf16.vlgmr.msra.gmra.mxu0 %v377_v35 }
 0x1c8   : > { %v451_v37 = vpop.f32.mrf.mxu0 }
 0x1c9   : > { %v455_v38 = vadd.f32 %v451_v37, %v346_v0 }
 0x1cb   : > { %v460_v39 = vadd.f32 %v1009_v36, %v455_v38  ;;  %v1011_v38 = vld [vmem:[%s1448_s6] ss:$0 sm:$0xff] }
 0x1cd   : > { %461 = vadd.xlane.f32.xlu1 %v460_v39 }
 0x1d0   : > { %v453_v40 = vpop.f32.mrf.mxu0 }
 0x240   : > { %v462_v41 = vpop.xlane.xlu1 %461 }
 0x241   : > { %v463_v42 = vmul.f32 %v462_v41, %v1393_v7 }
 0x243   : > { %v464_v43 = vsub.f32 %v460_v39, %v463_v42 }
 0x245   : > { %v465_v44 = vmul.f32 %v464_v43, %v464_v43 }
 0x247   : > { %466 = vadd.xlane.f32.xlu1 %v465_v44 }
 0x2ba   : > { %v467_v53 = vpop.xlane.xlu1 %466 }
 0x2bb   : > { %v468_v54 = vmul.f32 0.007874016, %v467_v53 }
 0x2bd   : > { %1018 = vrsqrt.f32 %v468_v54  ;;  %vm476_vm3 = vcmp.eq.f32.partialorder %v468_v54, inf  ;;  %v479_v62 = vand.u32 2147483648, %v468_v54  ;;  %vm478_vm4 = vcmp.eq.f32.partialorder %v468_v54, 0.0 }
 0x2c3   : > { %v1019_v55 = vpop.eup %1018 }
 0x2c4   : > { %v470_v56 = vmul.f32 %v1019_v55, %v468_v54 }
 0x2c6   : > { %v471_v57 = vmul.f32 %v1019_v55, %v470_v56 }
 0x2c8   : > { %v472_v58 = vmul.f32 0.5, %v471_v57 }
 0x2ca   : > { %v473_v59 = vsub.f32 1.5, %v472_v58 }
 0x2cc   : > { %v474_v60 = vmul.f32 %v1019_v55, %v473_v59 }
 0x2ce   : > { %v475_v61 = vmul.f32 %v474_v60, %v468_v54 }
 0x2d0   : > { %v477_v63 = vsel %vm476_vm3, %v468_v54, %v475_v61 }
 0x2d1   : > { %v480_v0 = vsel %vm478_vm4, %v479_v62, %v477_v63 }
 0x2d2   : > { %v481_v1 = vadd.f32 1e-06, %v480_v0 }
 0x2d4   : > { %1020 = vrcp.f32 %v481_v1 }
 0x2da   : > { %v1021_v2 = vpop.eup %1020 }
 0x2db   : > { %v483_v3 = vmul.f32 %v1021_v2, %v464_v43 }
 0x2dd   : > { %v484_v4 = vpack.c.bf16 %v483_v3, %v483_v3 }
 0x2df   : > { %557 = vmatmul.bf16.vlgmr.msra.gmra.mxu1 %v484_v4 }
 0x35c   : > { %v558_v6 = vpop.f32.mrf.mxu1 }
 0x35d   : > { %v562_v8 = vadd.f32 %v558_v6, %v460_v39 }
 0x35f   : > { %v567_v9 = vadd.f32 %v1010_v5, %v562_v8 }
 0x361   : > { %568 = vadd.xlane.f32.xlu2 %v567_v9 }
 0x364   : > { %v560_v10 = vpop.f32.mrf.mxu1 }
 0x3d4   : > { %v569_v11 = vpop.xlane.xlu2 %568 }
 0x3d5   : > { %v570_v12 = vmul.f32 %v569_v11, %v1393_v7 }
 0x3d7   : > { %v571_v13 = vsub.f32 %v567_v9, %v570_v12 }
 0x3d9   : > { %v572_v14 = vmul.f32 %v571_v13, %v571_v13 }
 0x3db   : > { %573 = vadd.xlane.f32.xlu2 %v572_v14 }
 0x44e   : > { %v574_v23 = vpop.xlane.xlu2 %573 }
 0x44f   : > { %v575_v7 = vmul.f32 0.007874016, %v574_v23 }
 0x451   : > { %1022 = vrsqrt.f32 %v575_v7  ;;  %vm583_vm5 = vcmp.eq.f32.partialorder %v575_v7, inf  ;;  %v586_v31 = vand.u32 2147483648, %v575_v7  ;;  %vm585_vm6 = vcmp.eq.f32.partialorder %v575_v7, 0.0 }
 0x457   : > { %v1023_v24 = vpop.eup %1022 }
 0x458   : > { %v577_v25 = vmul.f32 %v1023_v24, %v575_v7 }
 0x45a   : > { %v578_v26 = vmul.f32 %v1023_v24, %v577_v25 }
 0x45c   : > { %v579_v27 = vmul.f32 0.5, %v578_v26 }
 0x45e   : > { %v580_v28 = vsub.f32 1.5, %v579_v27 }
 0x460   : > { %v581_v29 = vmul.f32 %v1023_v24, %v580_v28 }
 0x462   : > { %v582_v30 = vmul.f32 %v581_v29, %v575_v7 }
 0x464   : > { %v584_v32 = vsel %vm583_vm5, %v575_v7, %v582_v30 }
 0x465   : > { %v587_v33 = vsel %vm585_vm6, %v586_v31, %v584_v32 }
 0x466   : > { %v588_v34 = vadd.f32 1e-06, %v587_v33 }
 0x468   : > { %1024 = vrcp.f32 %v588_v34 }
 0x46e   : > { %v1025_v35 = vpop.eup %1024 }
 0x46f   : > { %v590_v36 = vmul.f32 %v1025_v35, %v571_v13 }
 0x471   : > { %v591_v37 = vpack.c.bf16 %v590_v36, %v590_v36 }
 0x473   : > { %664 = vmatmul.bf16.vlgmr.msra.gmra.mxu2 %v591_v37 }
 0x4f6   : > { %v665_v39 = vpop.f32.mrf.mxu2 }
 0x4f7   : > { %v669_v40 = vadd.f32 %v665_v39, %v567_v9 }
 0x4f9   : > { %v674_v41 = vadd.f32 %v1011_v38, %v669_v40 }
 0x4fb   : > { %675 = vst [vmem:[%s345_s21] sm:$0xff] %v674_v41 }
 0x4fc   : > { %1173 = shalt.err (!%p1170_p9)
}
 0x4fd   : > { %943 = dma.vmem_to_hbm [thread:$0]  (%p1344_p13), %s690_s18, 128, %s692_s1, %s677_s8  }
 0x4fe   : > { %v667_v42 = vpop.f32.mrf.mxu2 }
 0x4ff PF: > { %s703_s15 = sand.u32 1, %s1208_s24   ;;  %p1458_p10 = scmp.ge.s32.totalorder %s1220_s27, 2 }
 0x500   : > { %s704_s30 = scalar_lea.sflag [#allocation4], %s703_s15 }
 0x501   : > { %p960_p11 = pnand %p1458_p10, %p1349_p4 }
 0x503   : > { %p961_p0 = pneg %p960_p11 }
 0x505   : > { %1203 = dma.done.wait (%p961_p0), %s704_s30, 128  }
 0x506   : > { %1205 = vsyncadd (%p961_p0), %s704_s30, 4294967168  ;;  %p22_p2 = scmp.ge.s32.totalorder %s1324_s10, 4   ;;  %s1459_s24 = smov %s1212_s25 }
 0x507   : > { %s1460_s25 = smov %s1216_s26  ;;  %s1461_s26 = smov %s1336_s11 }
 0x508   : > { %s1462_s27 = smov %s1324_s10  ;;  %24 = sbr.rel (!%p22_p2) target bundleno = 9 (0x9), region = 105 }
 0x50d   :  { %710 = vsyncpa [#allocation3], 1 }
 0x50e   :  { %712 = vsyncpa [#allocation3 + $0x1], 1 }
 0x50f   :  { %713 = vsyncpa [#allocation6], 1 }
 0x510   :  { %714 = vsyncpa [#allocation9], 1 }
 0x511   :  { %715 = vsyncpa [#allocation4], 1 }
 0x512   :  { %717 = vsyncpa [#allocation4 + $0x1], 1 }

</bundles_post_ra>
